<compile_context>
chip_gen: v7x
topology: tpu7x:2x2x1
jax: 0.10.0
libtpu: 0.0.40
codegen_flags: <defaults>
</compile_context>

<pallas_src>
import functools

import jax
import jax.numpy as jnp
from jax.experimental import pallas as pl
from jax.experimental.pallas import tpu as pltpu


def _tpu_vmem_capacity_bytes():
    """Best-effort per-core VMEM capacity; conservative (v7x) fallback."""
    try:
        info = pltpu.get_tpu_info()
        v = getattr(info, "vmem_capacity_bytes", None)
        if v:
            return int(v)
    except Exception:
        pass
    return 64 << 20


def _choose_pack(n_rows, num_label):
    """Lane-packing factor k: view logits as (N/k, k*C) so small C fills lanes."""
    if num_label < 1 or num_label > 64 or n_rows <= 0:
        return 1
    k0 = 128 // num_label
    if k0 <= 1:
        return 1
    best = 1
    for k in range(k0, 0, -1):
        if n_rows % k == 0:
            best = k
            break
    if 2 * best >= k0:
        return best      # free metadata reshape, >= half the ideal lane density
    return k0            # needs row padding (one extra HBM pass over logits; rare)


def _choose_tm(n_rows, lane_width, tm, big_vmem):
    lanes_pad = max(128, ((lane_width + 127) // 128) * 128)
    if tm is None:
        # Per-f32-tile cap: ~5 MiB on v5e/v6e (128 MiB VMEM), ~2 MiB on v7x.
        tile_cap = (5 << 20) if big_vmem else (2 << 20)
        tm = min(8192, max(8, tile_cap // (lanes_pad * 4)))
    tm = max(8, (tm // 8) * 8)
    tm = min(tm, ((n_rows + 7) // 8) * 8)
    return tm


def _focal_loss_kernel(x_ref, t_ref, *rest, gamma, ignore_index, n_rows_packed,
                       tm, tiles_per_split, has_alpha, pack, num_label):
    # x_ref:     (TM, pack*C) logits tile (native dtype), pack rows per packed row
    # t_ref:     (TM, pack)   int32 targets tile
    # alpha_ref: (1, pack*C)  f32 per-class weights tiled pack times (if has_alpha)
    # sum_ref:   (1, 1, 1)    f32 per-split accumulator (sum of loss)
    # cnt_ref:   (1, 1, 1)    f32 per-split accumulator (valid-row count)
    if has_alpha:
        alpha_ref, sum_ref, cnt_ref = rest
    else:
        alpha_ref = None
        sum_ref, cnt_ref = rest

    split = pl.program_id(0)      # outer "parallel" axis (2 TCs on v7x)
    i = pl.program_id(1)          # row-tile index within the split ("arbitrary")

    @pl.when(i == 0)
    def _():
        sum_ref[...] = jnp.zeros_like(sum_ref)
        cnt_ref[...] = jnp.zeros_like(cnt_ref)

    lanes = pack * num_label

    # Logical (unclamped) packed-row offset of this tile; redundant / partial
    # tiles contribute exactly zero through the row-validity mask below.
    row_start = (split * tiles_per_split + i) * tm
    prow = row_start + jax.lax.broadcasted_iota(jnp.int32, (tm, 1), 0)
    row_ok = prow < n_rows_packed                               # (TM, 1)

    x = x_ref[...].astype(jnp.float32)                          # (TM, lanes)
    tp = t_ref[...]                                             # (TM, pack)

    # Shared per-packed-row stabilizer (exact per-row max when pack == 1); the
    # stabilizer cancels exactly in logpt = z_t - log(sum exp(z)).
    m = jnp.max(x, axis=-1, keepdims=True)
    z = x - m
    ez = jnp.exp(z)

    t_in = jnp.logical_and(tp >= 0, tp < num_label)             # (TM, pack)
    t_safe = jnp.where(t_in, tp, 0)

    if pack == 1:
        # Unpacked path (C > 64): plain lane reductions, select-based gather.
        col = jax.lax.broadcasted_iota(jnp.int32, (tm, lanes), 1)
        sel = col == t_safe                                     # (TM, C)
        sumexp = jnp.sum(ez, axis=-1, keepdims=True)            # (TM, 1)
        z_t = jnp.sum(jnp.where(sel, z, 0.0), axis=-1, keepdims=True)
        if has_alpha:
            at = jnp.sum(jnp.where(sel, alpha_ref[...], 0.0),
                         axis=-1, keepdims=True)
    else:
        # Packed path: per-segment (length-C) sums via a small MXU matmul with
        # the constant segment-indicator matrix seg[(lanes, pack)].
        jS = jax.lax.broadcasted_iota(jnp.int32, (lanes, pack), 0)
        gS = jax.lax.broadcasted_iota(jnp.int32, (lanes, pack), 1)
        lo = gS * num_label
        seg = jnp.logical_and(jS >= lo, jS < lo + num_label).astype(jnp.float32)

        # Expand the flat target lane (g*C + t) across its segment's lanes.
        gsm = jax.lax.broadcasted_iota(jnp.int32, (tm, pack), 1)
        t_flat = (gsm * num_label + t_safe).astype(jnp.float32)   # (TM, pack)
        t_lane = jax.lax.dot_general(t_flat, seg, (((1,), (1,)), ((), ())),
                                     preferred_element_type=jnp.float32)
        colf = jax.lax.broadcasted_iota(jnp.int32, (tm, lanes), 1
                                        ).astype(jnp.float32)
        sel = colf == t_lane                                    # (TM, lanes)

        sumexp = jnp.dot(ez, seg, preferred_element_type=jnp.float32)
        z_t = jnp.dot(jnp.where(sel, z, 0.0), seg,
                      preferred_element_type=jnp.float32)        # (TM, pack)
        if has_alpha:
            at = jnp.dot(jnp.where(sel, alpha_ref[...], 0.0), seg,
                         preferred_element_type=jnp.float32)

    # Floor guards exp underflow when the shared stabilizer is far above a
    # segment's own max (cross-example logit spread > ~85 in a packed row).
    lse = jnp.log(jnp.maximum(sumexp, 1e-37))
    logpt = z_t - lse
    pt = jnp.exp(logpt)
    if has_alpha:
        logpt = logpt * at

    one_minus_pt = jnp.maximum(1.0 - pt, 0.0)
    if gamma == 0.0:
        loss = -logpt
    elif gamma == 1.0:
        loss = -(one_minus_pt * logpt)
    elif gamma == 2.0:
        loss = -(one_minus_pt * one_minus_pt * logpt)
    else:
        loss = -(jnp.power(one_minus_pt, gamma) * logpt)

    # NaN/Inf-safe masking of garbage tail rows + ignored / out-of-range targets.
    valid = jnp.logical_and(jnp.logical_and(row_ok, tp != ignore_index), t_in)
    sum_ref[...] = sum_ref[...] + jnp.sum(jnp.where(valid, loss, 0.0))
    cnt_ref[...] = cnt_ref[...] + jnp.sum(valid.astype(jnp.float32))


def focal_loss(logits, target, *, gamma=0.0, ignore_index=-100, alpha=None,
               size_average=True, tm=None):
    """Replicates FocalLoss.forward(input, target) from the PyTorch module.

    tm (optional) is the number of *packed* rows per tile, for testing.
    """
    num_label = logits.shape[-1]
    x = logits.reshape(-1, num_label)                 # native dtype, no upcast
    t = target.reshape(-1, 1).astype(jnp.int32)
    n = x.shape[0]

    has_alpha = alpha is not None
    alpha_arr = None
    if has_alpha:
        if isinstance(alpha, (float, int)):
            if num_label != 2:
                raise ValueError(
                    "scalar alpha implies num_label == 2, got %d" % num_label)
            alpha_arr = jnp.array([[float(alpha), 1.0 - float(alpha)]],
                                  jnp.float32)
        else:
            alpha_arr = jnp.asarray(alpha, jnp.float32).reshape(1, -1)
            if alpha_arr.shape[-1] != num_label:
                raise ValueError("alpha must have num_label entries")

    vmem_cap = _tpu_vmem_capacity_bytes()
    big_vmem = vmem_cap >= (100 << 20)       # v5e/v6e (128 MiB) vs v7x (64 MiB/TC)

    # Lane packing: k original rows per packed row of k*C lanes.
    k = _choose_pack(n, num_label)
    n_packed = -(-n // k)
    pad_rows = n_packed * k - n
    if pad_rows:
        # Rare (no good divisor of n): pad rows; padded targets = ignore_index
        # so they are excluded from loss and count inside the kernel.
        x = jnp.pad(x, ((0, pad_rows), (0, 0)))
        t = jnp.pad(t, ((0, pad_rows), (0, 0)), constant_values=ignore_index)
    lanes = k * num_label
    xp = x.reshape(n_packed, lanes)          # free metadata reshape when no pad
    tp = t.reshape(n_packed, k)
    if has_alpha and k > 1:
        alpha_arr = jnp.tile(alpha_arr, (1, k))            # (1, k*C)

    tm = _choose_tm(n_packed, lanes, tm, big_vmem)
    total_tiles = -(-n_packed // tm)
    num_splits = 1 if big_vmem else 2        # 2-way outer split only for v7x/unknown
    num_splits = max(1, min(num_splits, total_tiles))
    tiles_per_split = -(-total_tiles // num_splits)
    max_blk = total_tiles - 1

    def row_map(c, i):
        # Clamp so the DMA source block always overlaps the array; redundant
        # (fully out-of-range) tiles are zeroed by the in-kernel row mask.
        return (jnp.minimum(c * tiles_per_split + i, max_blk), 0)

    in_specs = [pl.BlockSpec((tm, lanes), row_map),
                pl.BlockSpec((tm, k), row_map)]
    inputs = [xp, tp]
    if has_alpha:
        in_specs.append(pl.BlockSpec((1, lanes), lambda c, i: (0, 0)))
        inputs.append(alpha_arr)

    kernel = functools.partial(
        _focal_loss_kernel, gamma=float(gamma), ignore_index=int(ignore_index),
        n_rows_packed=n_packed, tm=tm, tiles_per_split=tiles_per_split,
        has_alpha=has_alpha, pack=k, num_label=num_label)

    # Generous VMEM budget: double-buffered inputs + f32 temporaries (lane
    # padded to 128).  Ceiling gated by generation (48 MiB v7x, 96 MiB v5e/v6e).
    lanes_pad = max(128, ((lanes + 127) // 128) * 128)
    vmem_need = 16 * tm * lanes_pad * 4 + (8 << 20)
    vmem_ceiling = (96 << 20) if big_vmem else (48 << 20)
    vmem_limit = int(min(max(vmem_need, 32 << 20), vmem_ceiling))

    loss_parts, cnt_parts = pl.pallas_call(
        kernel,
        out_shape=(jax.ShapeDtypeStruct((num_splits, 1, 1), jnp.float32),
                   jax.ShapeDtypeStruct((num_splits, 1, 1), jnp.float32)),
        grid_spec=pltpu.PrefetchScalarGridSpec(
            num_scalar_prefetch=0,
            grid=(num_splits, tiles_per_split),
            in_specs=in_specs,
            out_specs=[pl.BlockSpec((1, 1, 1), lambda c, i: (c, 0, 0)),
                       pl.BlockSpec((1, 1, 1), lambda c, i: (c, 0, 0))],
        ),
        compiler_params=pltpu.CompilerParams(
            dimension_semantics=("parallel", "arbitrary"),
            vmem_limit_bytes=vmem_limit),
    )(*inputs)

    loss_sum = jnp.sum(loss_parts)
    cnt = jnp.sum(cnt_parts)
    if size_average:
        return loss_sum / cnt
    return loss_sum


def _focal_loss_ref(logits, target, *, gamma, ignore_index, alpha,
                    size_average):
    """Pure-JAX reference mirroring the PyTorch forward."""
    num_label = logits.shape[-1]
    x = logits.reshape(-1, num_label).astype(jnp.float32)
    t = target.reshape(-1).astype(jnp.int32)
    mask = jnp.logical_and(t != ignore_index,
                           jnp.logical_and(t >= 0, t < num_label))
    logp = jax.nn.log_softmax(x, axis=-1)
    t_safe = jnp.where(mask, t, 0)
    logpt = jnp.take_along_axis(logp, t_safe[:, None], axis=1)[:, 0]
    pt = jnp.exp(logpt)
    if alpha is not None:
        if isinstance(alpha, (float, int)):
            a = jnp.array([float(alpha), 1.0 - float(alpha)], jnp.float32)
        else:
            a = jnp.asarray(alpha, jnp.float32)
        logpt = logpt * a[t_safe]
    loss = -1.0 * (1.0 - pt) ** gamma * logpt
    loss = jnp.where(mask, loss, 0.0)
    if size_average:
        return jnp.sum(loss) / jnp.sum(mask.astype(jnp.float32))
    return jnp.sum(loss)


if __name__ == "__main__":
    key = jax.random.PRNGKey(0)

    def run_case(seed_key, B, S, C, *, gamma, alpha, size_average, tm=None,
                 ignores=()):
        k1, k2 = jax.random.split(seed_key)
        logits = jax.random.normal(k1, (B, S, C), jnp.float32)
        target = jax.random.randint(k2, (B, S), 0, C, jnp.int32)
        for (b, s) in ignores:
            target = target.at[b, s].set(-100)
        out = focal_loss(logits, target, gamma=gamma, ignore_index=-100,
                         alpha=alpha, size_average=size_average, tm=tm)
        out = jax.block_until_ready(out)
        ref = _focal_loss_ref(logits, target, gamma=gamma, ignore_index=-100,
                              alpha=alpha, size_average=size_average)
        assert jnp.allclose(out, ref, rtol=1e-4, atol=1e-5), (B, S, C, out, ref)

    keys = jax.random.split(key, 5)

    # 1) small-C packed path (C=8 -> k=16), per-class alpha, gamma=2, mean.
    run_case(keys[0], 2, 8, 8, gamma=2.0,
             alpha=[0.1, 0.2, 0.05, 0.15, 0.1, 0.1, 0.2, 0.1],
             size_average=True, ignores=[(0, 0), (1, 7)])

    # 2) C=6 -> k=21 (packed lane width 126 < 128), gamma=0, sum reduction.
    run_case(keys[1], 3, 7, 6, gamma=0.0, alpha=None, size_average=False,
             ignores=[(0, 1), (2, 6)])

    # 3) C=10 -> k=8, several row tiles (tm=8) so the inner-axis accumulation
    #    and the outer split are exercised; non-special gamma (pow path).
    run_case(keys[2], 4, 64, 10, gamma=1.5, alpha=None, size_average=True,
             tm=8, ignores=[(1, 3), (3, 15)])

    # 4) binary head with scalar alpha: n=18 has no good divisor of k0=64,
    #    exercises the row-padding branch (k=64, ignore-padded targets).
    run_case(keys[3], 2, 9, 2, gamma=1.0, alpha=0.25, size_average=True,
             ignores=[(0, 4)])

    # 5) C=160 (>64) -> unpacked k=1 path, two row tiles, partial tail masking.
    run_case(keys[4], 2, 16, 160, gamma=2.0, alpha=None, size_average=True,
             tm=16, ignores=[(0, 2), (1, 15)])

    print("KERNEL_OK")
</pallas_src>

<mosaic_0001>
module attributes {stable_mosaic.version = 11 : i64} {
  func.func @_focal_loss_kernel(%arg0: i32, %arg1: i32, %arg2: memref<8x128xf32, #tpu.memory_space<vmem>>, %arg3: memref<8x16xi32, #tpu.memory_space<vmem>>, %arg4: memref<1x128xf32, #tpu.memory_space<vmem>>, %arg5: memref<1x1x1xf32, #tpu.memory_space<vmem>>, %arg6: memref<1x1x1xf32, #tpu.memory_space<vmem>>) attributes {dimension_semantics = [#tpu.dimension_semantics<parallel>, #tpu.dimension_semantics<arbitrary>], iteration_bounds = array<i64: 1, 1>, scalar_prefetch = 0 : i64, scratch_operands = 0 : i64, tpu.core_type = #tpu.core_type<tc>, window_params = [{transform_indices = @transform_0, window_bounds = array<i64: 8, 128>}, {transform_indices = @transform_1, window_bounds = array<i64: 8, 16>}, {pipeline_mode = #tpu.pipeline_mode<synchronous>, transform_indices = @transform_2, window_bounds = array<i64: 1, 128>}, {transform_indices = @transform_3, window_bounds = array<i64: 1, 1, 1>}, {transform_indices = @transform_4, window_bounds = array<i64: 1, 1, 1>}]} {
    %c0_i32 = arith.constant 0 : i32
    %0 = arith.cmpi eq, %arg1, %c0_i32 : i32
    %1 = arith.extui %0 : i1 to i32
    %c0_i32_0 = arith.constant 0 : i32
    %2 = arith.cmpi ne, %1, %c0_i32_0 : i32
    scf.if %2 {
      %cst_38 = arith.constant 0.000000e+00 : f32
      %94 = vector.broadcast %cst_38 : f32 to vector<1x1x1xf32>
      %c0_39 = arith.constant 0 : index
      %c0_40 = arith.constant 0 : index
      %c0_41 = arith.constant 0 : index
      %95 = vector.load %arg5[%c0_39, %c0_40, %c0_41] : memref<1x1x1xf32, #tpu.memory_space<vmem>>, vector<1x1x1xf32>
      tpu.vector_store %arg5[%c0_39, %c0_40, %c0_41], %94 {strides = array<i32>} : memref<1x1x1xf32, #tpu.memory_space<vmem>>, vector<1x1x1xf32>,
      %cst_42 = arith.constant 0.000000e+00 : f32
      %96 = vector.broadcast %cst_42 : f32 to vector<1x1x1xf32>
      %c0_43 = arith.constant 0 : index
      %c0_44 = arith.constant 0 : index
      %c0_45 = arith.constant 0 : index
      %97 = vector.load %arg6[%c0_43, %c0_44, %c0_45] : memref<1x1x1xf32, #tpu.memory_space<vmem>>, vector<1x1x1xf32>
      tpu.vector_store %arg6[%c0_43, %c0_44, %c0_45], %96 {strides = array<i32>} : memref<1x1x1xf32, #tpu.memory_space<vmem>>, vector<1x1x1xf32>,
    } else {
    }
    %c1_i32 = arith.constant 1 : i32
    %3 = arith.muli %arg0, %c1_i32 : i32
    %4 = arith.addi %3, %arg1 : i32
    %c8_i32 = arith.constant 8 : i32
    %5 = arith.muli %4, %c8_i32 : i32
    %6 = tpu.iota {dimensions = array<i32: 0>} : vector<8x1xi32>
    %7 = vector.broadcast %5 : i32 to vector<8x1xi32>
    %8 = arith.addi %7, %6 : vector<8x1xi32>
    %c1_i32_1 = arith.constant 1 : i32
    %9 = vector.broadcast %c1_i32_1 : i32 to vector<8x1xi32>
    %10 = arith.cmpi slt, %8, %9 : vector<8x1xi32>
    %c0 = arith.constant 0 : index
    %c0_2 = arith.constant 0 : index
    %11 = vector.load %arg2[%c0, %c0_2] : memref<8x128xf32, #tpu.memory_space<vmem>>, vector<8x128xf32>
    %c0_3 = arith.constant 0 : index
    %c0_4 = arith.constant 0 : index
    %12 = vector.load %arg3[%c0_3, %c0_4] : memref<8x16xi32, #tpu.memory_space<vmem>>, vector<8x16xi32>
    %cst = arith.constant dense<0xFF800000> : vector<8xf32>
    %13 = vector.multi_reduction <maximumf>, %11, %cst [1] : vector<8x128xf32> to vector<8xf32>
    %14 = vector.shape_cast %13 : vector<8xf32> to vector<8x1xf32>
    %15 = vector.broadcast %14 : vector<8x1xf32> to vector<8x128xf32>
    %16 = arith.subf %11, %15 : vector<8x128xf32>
    %17 = math.exp %16 : vector<8x128xf32>
    %c0_i32_5 = arith.constant 0 : i32
    %18 = vector.broadcast %c0_i32_5 : i32 to vector<8x16xi32>
    %19 = arith.cmpi sge, %12, %18 : vector<8x16xi32>
    %c8_i32_6 = arith.constant 8 : i32
    %20 = vector.broadcast %c8_i32_6 : i32 to vector<8x16xi32>
    %21 = arith.cmpi slt, %12, %20 : vector<8x16xi32>
    %22 = arith.andi %19, %21 : vector<8x16xi1>
    %c0_i32_7 = arith.constant 0 : i32
    %23 = vector.broadcast %c0_i32_7 : i32 to vector<8x16xi32>
    %24 = arith.select %22, %12, %23 : vector<8x16xi1>, vector<8x16xi32>
    %25 = tpu.iota {dimensions = array<i32: 0>} : vector<128x16xi32>
    %26 = tpu.iota {dimensions = array<i32: 1>} : vector<128x16xi32>
    %c8_i32_8 = arith.constant 8 : i32
    %27 = vector.broadcast %c8_i32_8 : i32 to vector<128x16xi32>
    %28 = arith.muli %26, %27 : vector<128x16xi32>
    %29 = arith.cmpi sge, %25, %28 : vector<128x16xi32>
    %c8_i32_9 = arith.constant 8 : i32
    %30 = vector.broadcast %c8_i32_9 : i32 to vector<128x16xi32>
    %31 = arith.addi %28, %30 : vector<128x16xi32>
    %32 = arith.cmpi slt, %25, %31 : vector<128x16xi32>
    %33 = arith.andi %29, %32 : vector<128x16xi1>
    %34 = arith.extui %33 : vector<128x16xi1> to vector<128x16xi32>
    %35 = arith.sitofp %34 : vector<128x16xi32> to vector<128x16xf32>
    %36 = tpu.iota {dimensions = array<i32: 1>} : vector<8x16xi32>
    %c8_i32_10 = arith.constant 8 : i32
    %37 = vector.broadcast %c8_i32_10 : i32 to vector<8x16xi32>
    %38 = arith.muli %36, %37 : vector<8x16xi32>
    %39 = arith.addi %38, %24 : vector<8x16xi32>
    %40 = arith.sitofp %39 : vector<8x16xi32> to vector<8x16xf32>
    %cst_11 = arith.constant dense<0.000000e+00> : vector<8x128xf32>
    %41 = tpu.matmul %40, %35, %cst_11 {dimension_numbers = #tpu.dot_dimension_numbers<[1], [1], [0], [0], [0, 0, 1, 0], [], []>} : vector<8x16xf32>, vector<128x16xf32>, vector<8x128xf32> -> vector<8x128xf32>
    %42 = tpu.iota {dimensions = array<i32: 1>} : vector<8x128xi32>
    %43 = arith.sitofp %42 : vector<8x128xi32> to vector<8x128xf32>
    %44 = arith.cmpf oeq, %43, %41 : vector<8x128xf32>
    %cst_12 = arith.constant dense<0.000000e+00> : vector<8x16xf32>
    %45 = tpu.matmul %17, %35, %cst_12 {dimension_numbers = #tpu.dot_dimension_numbers<[1], [0], [0], [1], [0, 0, 1, 1], [], []>} : vector<8x128xf32>, vector<128x16xf32>, vector<8x16xf32> -> vector<8x16xf32>
    %cst_13 = arith.constant 0.000000e+00 : f32
    %46 = vector.broadcast %cst_13 : f32 to vector<8x128xf32>
    %47 = arith.select %44, %16, %46 : vector<8x128xi1>, vector<8x128xf32>
    %cst_14 = arith.constant dense<0.000000e+00> : vector<8x16xf32>
    %48 = tpu.matmul %47, %35, %cst_14 {dimension_numbers = #tpu.dot_dimension_numbers<[1], [0], [0], [1], [0, 0, 1, 1], [], []>} : vector<8x128xf32>, vector<128x16xf32>, vector<8x16xf32> -> vector<8x16xf32>
    %c0_15 = arith.constant 0 : index
    %c0_16 = arith.constant 0 : index
    %49 = vector.load %arg4[%c0_15, %c0_16] : memref<1x128xf32, #tpu.memory_space<vmem>>, vector<1x128xf32>
    %cst_17 = arith.constant 0.000000e+00 : f32
    %50 = vector.shape_cast %49 : vector<1x128xf32> to vector<1x128xf32>
    %51 = vector.broadcast %50 : vector<1x128xf32> to vector<8x128xf32>
    %52 = vector.broadcast %cst_17 : f32 to vector<8x128xf32>
    %53 = arith.select %44, %51, %52 : vector<8x128xi1>, vector<8x128xf32>
    %cst_18 = arith.constant dense<0.000000e+00> : vector<8x16xf32>
    %54 = tpu.matmul %53, %35, %cst_18 {dimension_numbers = #tpu.dot_dimension_numbers<[1], [0], [0], [1], [0, 0, 1, 1], [], []>} : vector<8x128xf32>, vector<128x16xf32>, vector<8x16xf32> -> vector<8x16xf32>
    %cst_19 = arith.constant 9.99999991E-38 : f32
    %55 = vector.broadcast %cst_19 : f32 to vector<8x16xf32>
    %56 = arith.maximumf %45, %55 : vector<8x16xf32>
    %57 = math.log %56 : vector<8x16xf32>
    %58 = arith.subf %48, %57 : vector<8x16xf32>
    %59 = math.exp %58 : vector<8x16xf32>
    %60 = arith.mulf %58, %54 : vector<8x16xf32>
    %cst_20 = arith.constant 1.000000e+00 : f32
    %61 = vector.broadcast %cst_20 : f32 to vector<8x16xf32>
    %62 = arith.subf %61, %59 : vector<8x16xf32>
    %cst_21 = arith.constant 0.000000e+00 : f32
    %63 = vector.broadcast %cst_21 : f32 to vector<8x16xf32>
    %64 = arith.maximumf %62, %63 : vector<8x16xf32>
    %65 = arith.mulf %64, %64 : vector<8x16xf32>
    %66 = arith.mulf %65, %60 : vector<8x16xf32>
    %cst_22 = arith.constant 0.000000e+00 : f32
    %67 = vector.broadcast %cst_22 : f32 to vector<8x16xf32>
    %68 = arith.subf %67, %66 : vector<8x16xf32>
    %c-100_i32 = arith.constant -100 : i32
    %69 = vector.broadcast %c-100_i32 : i32 to vector<8x16xi32>
    %70 = arith.cmpi ne, %12, %69 : vector<8x16xi32>
    %71 = vector.broadcast %10 : vector<8x1xi1> to vector<8x16xi1>
    %72 = arith.andi %71, %70 : vector<8x16xi1>
    %73 = arith.andi %72, %22 : vector<8x16xi1>
    %c0_23 = arith.constant 0 : index
    %c0_24 = arith.constant 0 : index
    %c0_25 = arith.constant 0 : index
    %74 = vector.load %arg5[%c0_23, %c0_24, %c0_25] : memref<1x1x1xf32, #tpu.memory_space<vmem>>, vector<1x1x1xf32>
    %cst_26 = arith.constant 0.000000e+00 : f32
    %75 = vector.broadcast %cst_26 : f32 to vector<8x16xf32>
    %76 = arith.select %73, %68, %75 : vector<8x16xi1>, vector<8x16xf32>
    %77 = vector.shape_cast %76 : vector<8x16xf32> to vector<1x8x16xf32>
    %cst_27 = arith.constant dense<0.000000e+00> : vector<1xf32>
    %78 = vector.multi_reduction <add>, %77, %cst_27 [1, 2] : vector<1x8x16xf32> to vector<1xf32>
    %79 = vector.shape_cast %78 : vector<1xf32> to vector<1x1x1xf32>
    %80 = vector.extract %79[0, 0, 0] : f32 from vector<1x1x1xf32>
    %81 = vector.broadcast %80 : f32 to vector<1x1x1xf32>
    %82 = arith.addf %74, %81 : vector<1x1x1xf32>
    %c0_28 = arith.constant 0 : index
    %c0_29 = arith.constant 0 : index
    %c0_30 = arith.constant 0 : index
    %83 = vector.load %arg5[%c0_28, %c0_29, %c0_30] : memref<1x1x1xf32, #tpu.memory_space<vmem>>, vector<1x1x1xf32>
    tpu.vector_store %arg5[%c0_28, %c0_29, %c0_30], %82 {strides = array<i32>} : memref<1x1x1xf32, #tpu.memory_space<vmem>>, vector<1x1x1xf32>,
    %c0_31 = arith.constant 0 : index
    %c0_32 = arith.constant 0 : index
    %c0_33 = arith.constant 0 : index
    %84 = vector.load %arg6[%c0_31, %c0_32, %c0_33] : memref<1x1x1xf32, #tpu.memory_space<vmem>>, vector<1x1x1xf32>
    %85 = arith.extui %73 : vector<8x16xi1> to vector<8x16xi32>
    %86 = arith.sitofp %85 : vector<8x16xi32> to vector<8x16xf32>
    %87 = vector.shape_cast %86 : vector<8x16xf32> to vector<1x8x16xf32>
    %cst_34 = arith.constant dense<0.000000e+00> : vector<1xf32>
    %88 = vector.multi_reduction <add>, %87, %cst_34 [1, 2] : vector<1x8x16xf32> to vector<1xf32>
    %89 = vector.shape_cast %88 : vector<1xf32> to vector<1x1x1xf32>
    %90 = vector.extract %89[0, 0, 0] : f32 from vector<1x1x1xf32>
    %91 = vector.broadcast %90 : f32 to vector<1x1x1xf32>
    %92 = arith.addf %84, %91 : vector<1x1x1xf32>
    %c0_35 = arith.constant 0 : index
    %c0_36 = arith.constant 0 : index
    %c0_37 = arith.constant 0 : index
    %93 = vector.load %arg6[%c0_35, %c0_36, %c0_37] : memref<1x1x1xf32, #tpu.memory_space<vmem>>, vector<1x1x1xf32>
    tpu.vector_store %arg6[%c0_35, %c0_36, %c0_37], %92 {strides = array<i32>} : memref<1x1x1xf32, #tpu.memory_space<vmem>>, vector<1x1x1xf32>,
    return
  }
  func.func @transform_0(%arg0: i32, %arg1: i32) -> (i32, i32) {
    %c1_i32 = arith.constant 1 : i32
    %0 = arith.muli %arg0, %c1_i32 : i32
    %1 = arith.addi %0, %arg1 : i32
    %c0_i32 = arith.constant 0 : i32
    %2 = arith.minsi %1, %c0_i32 : i32
    %c0_i32_0 = arith.constant 0 : i32
    %c0_i32_1 = arith.constant 0 : i32
    return %2, %c0_i32_0 : i32, i32
  }
  func.func @transform_1(%arg0: i32, %arg1: i32) -> (i32, i32) {
    %c1_i32 = arith.constant 1 : i32
    %0 = arith.muli %arg0, %c1_i32 : i32
    %1 = arith.addi %0, %arg1 : i32
    %c0_i32 = arith.constant 0 : i32
    %2 = arith.minsi %1, %c0_i32 : i32
    %c0_i32_0 = arith.constant 0 : i32
    %c0_i32_1 = arith.constant 0 : i32
    return %2, %c0_i32_0 : i32, i32
  }
  func.func @transform_2(%arg0: i32, %arg1: i32) -> (i32, i32) {
    %c0_i32 = arith.constant 0 : i32
    %c0_i32_0 = arith.constant 0 : i32
    %c0_i32_1 = arith.constant 0 : i32
    return %c0_i32, %c0_i32_0 : i32, i32
  }
  func.func @transform_3(%arg0: i32, %arg1: i32) -> (i32, i32, i32) {
    %c0_i32 = arith.constant 0 : i32
    %c0_i32_0 = arith.constant 0 : i32
    %c0_i32_1 = arith.constant 0 : i32
    return %arg0, %c0_i32, %c0_i32_0 : i32, i32, i32
  }
  func.func @transform_4(%arg0: i32, %arg1: i32) -> (i32, i32, i32) {
    %c0_i32 = arith.constant 0 : i32
    %c0_i32_0 = arith.constant 0 : i32
    %c0_i32_1 = arith.constant 0 : i32
    return %arg0, %c0_i32, %c0_i32_0 : i32, i32, i32
  }
}

</mosaic_0001>

<bundles_post_ra>
// kernel: tpu_custom_call.1
= control target key start
LH: loop header
LB: loop body
LE: loop exit
PB: predicated region body
PF: predicated region fallthrough
CT: control target
= control target key end

     0   :  { %10 = vsyncpa [#allocation3], 0  ;;  %s1610_s0 = inlined_call_operand.hbm [shape: f32[1,128], index: 0, kind: input, shape index: {}]   ;;  %s1611_s1 = inlined_call_operand.vmem [shape: s32[1,16], index: 1, kind: input, shape index: {}]   ;;  %s1612_s2 = inlined_call_operand.vmem [shape: f32[1,128], index: 2, kind: input, shape index: {}]   ;;  %s1613_s3 = inlined_call_operand.hbm [shape: f32[1,1,1], index: 3, kind: output, shape index: {0}]   ;;  %s1614_s4 = inlined_call_operand.hbm [shape: f32[1,1,1], index: 4, kind: output, shape index: {1}]  }
   0x1   :  { %11 = vsyncpa [#allocation4], 0 }
   0x2   :  { %12 = vsyncpa [#allocation7], 0 }
   0x3   :  { %23 = vsyncadd [#allocation3], 112  ;;  %s1126_s15 = smov [#allocation2]   ;;  %s1054_s19 = scalar_lea.hbm %s1610_s0, 16 }
   0x4   :  { %s27_s16 = sshll.u32 %s1126_s15, 4  ;;  %p1055_p0 = scmp.ne.s32.totalorder %s1610_s0, %s1054_s19  ;;  %s28_s16 = int_to_ptr.vmem [resolvable:$true] %s27_s16 }
   0x5   :  { %p1058_p1 = scmp.lt.u32.totalorder %s1054_s19, %s1610_s0 }
   0x7   :  { %p1060_p2 = pnand %p1058_p1, %p1055_p0 }
   0x9   :  { %1063 = shalt.err (!%p1060_p2)
}
   0xa   :  { %s1064_s24 = scalar_lea.vmem %s28_s16, 16  ;;  %s1068_s25 = scalar_lea.vmem %s28_s16, 128 }
   0xb   :  { %p1065_p3 = scmp.ne.s32.totalorder %s28_s16, %s1064_s24  ;;  %p1069_p4 = scmp.lt.s32.totalorder %s28_s16, %s28_s16 }
   0xc   :  { %p1070_p5 = scmp.lt.s32.totalorder %s1068_s25, %s1064_s24 }
   0xe   :  { %p1071_p6 = por %p1070_p5, %p1069_p4 }
  0x10   :  { %p1072_p7 = pnand %p1071_p6, %p1065_p3 }
  0x12   :  { %1075 = shalt.err (!%p1072_p7)
}
  0x13   :  { %s1127_s26 = smov 16   ;;  %s1128_s27 = smov 1   ;;  %v95_v0 = vlaneseq }
  0x14   :  { %33 = dma.hbm_to_vmem [thread:$0]  %s1610_s0, 16, %s28_s16, [#allocation3], %s1127_s26, %s1127_s26, %s1128_s27  }
  0x15   :  { %1120 = dma.done.wait [#allocation3], 128  }
  0x16   :  { %1121 = vsyncadd [#allocation3], 4294967168  ;;  %v1129_v1 = vmov 0.0|0.0   ;;  %vm1615_vm0 = vcmask 0   ;;  %v1174_v2 = vshrl.u32 %v95_v0, 7  ;;  %v1176_v3 = vand.u32 127, %v95_v0 }
  0x17   :  { %931 = vmatprep.subr.bf16.mxu0 %v1129_v1  ;;  %963 = vmatprep.subr.bf16.mxu1 %v1129_v1  ;;  %v1130_v4 = vmov 0.0   ;;  %vm1616_vm1 = vmmov 0   ;;  %vm1618_vm2 = vcmask 130048   ;;  %v1198_v10 = vld [vmem:[#allocation2] sm:$0xff]  ;;  %v1132_v35 = vmov 1.0|1.0  }
  0x18   :  { %91 = vst.msk [vmem:[#allocation5] sm:$0x1] %vm1615_vm0, %v1130_v4  ;;  %92 = vst.msk [vmem:[#allocation6] sm:$0x1] %vm1615_vm0, %v1130_v4  ;;  %823 = vmatprep.mubr.msk.f32.mxu0 %vm1616_vm1, %v1130_v4  ;;  %858 = vmatprep.mubr.msk.f32.mxu1 %vm1616_vm1, %v1130_v4  ;;  %v111_v5 = vadd.s32 8, %v1174_v2  ;;  %v1188_v6 = vmul.u32 8, %v1176_v3 }
  0x19   :  { %v112_v7 = vadd.s32 16, %v1174_v2  ;;  %v113_v8 = vadd.s32 24, %v1174_v2  ;;  %vm1205_vm7 = vmpackc.low %vm1618_vm2, %vm1618_vm2  ;;  %102 = vmax.xlane.f32.xlu0 %v1198_v10  ;;  %v114_v19 = vadd.s32 32, %v1174_v2  ;;  %v115_v20 = vadd.s32 40, %v1174_v2  ;;  %s1134_s8 = smov [#allocation6]  }
  0x1a   :  { %vm129_vm3 = vcmp.ge.s32.totalorder %v1174_v2, %v1188_v6  ;;  %v1195_v9 = vadd.s32 8, %v1188_v6  ;;  %vm130_vm4 = vcmp.ge.s32.totalorder %v111_v5, %v1188_v6  ;;  %v116_v24 = vadd.s32 48, %v1174_v2  ;;  %s620_s9 = sshll.u32 %s1134_s8, 4  ;;  %s1576_s9 = int_to_ptr.vmem [resolvable:$true] %s620_s9 }
  0x1b   :  { %vm131_vm8 = vcmp.ge.s32.totalorder %v112_v7, %v1188_v6  ;;  %vm132_vm11 = vcmp.ge.s32.totalorder %v113_v8, %v1188_v6  ;;  %v117_v27 = vadd.s32 56, %v1174_v2  ;;  %v118_v34 = vadd.s32 64, %v1174_v2 }
  0x1c   :  { %vm146_vm5 = vcmp.lt.s32.totalorder %v1174_v2, %v1195_v9  ;;  %vm147_vm6 = vcmp.lt.s32.totalorder %v111_v5, %v1195_v9  ;;  %vm148_vm9 = vcmp.lt.s32.totalorder %v112_v7, %v1195_v9  ;;  %vm149_vm12 = vcmp.lt.s32.totalorder %v113_v8, %v1195_v9  ;;  %v1457_v8 = vld [vmem:[%s1611_s1] sm:$0xff] }
  0x1d   :  { %vm1212_vm10 = vmand %vm129_vm3, %vm146_vm5  ;;  %vm133_vm3 = vcmp.ge.s32.totalorder %v114_v19, %v1188_v6  ;;  %vm134_vm5 = vcmp.ge.s32.totalorder %v115_v20, %v1188_v6  ;;  %v119_v36 = vadd.s32 72, %v1174_v2  ;;  %v120_v44 = vadd.s32 80, %v1174_v2 }
  0x1e   :  { %vm1218_vm13 = vmand %vm130_vm4, %vm147_vm6  ;;  %v638_v14 = vsel %vm1212_vm10, 1.0, %v1130_v4  ;;  %vm150_vm4 = vcmp.lt.s32.totalorder %v114_v19, %v1195_v9  ;;  %vm151_vm6 = vcmp.lt.s32.totalorder %v115_v20, %v1195_v9  ;;  %v121_v45 = vadd.s32 88, %v1174_v2 }
  0x1f   :  { %v639_v15 = vsel %vm1218_vm13, 1.0, %v1130_v4  ;;  %vm1228_vm14 = vmand %vm131_vm8, %vm148_vm9  ;;  %v1649_v46 = vmov 0  ;;  %v122_v47 = vadd.s32 96, %v1174_v2  ;;  %v123_v50 = vadd.s32 104, %v1174_v2 }
  0x20   :  { %v932_v17 = vpack.c.bf16 %v639_v15, %v638_v14  ;;  %vm1232_vm15 = vmand %vm132_vm11, %vm149_vm12  ;;  %v640_v21 = vsel %vm1228_vm14, 1.0, %v1130_v4  ;;  %vm135_vm11 = vcmp.ge.s32.totalorder %v116_v24, %v1188_v6  ;;  %vm152_vm12 = vcmp.lt.s32.totalorder %v116_v24, %v1195_v9 }
  0x21   :  { %v641_v22 = vsel %vm1232_vm15, 1.0, %v1130_v4  ;;  %vm1252_vm8 = vmand %vm133_vm3, %vm150_vm4  ;;  %vm136_vm3 = vcmp.ge.s32.totalorder %v117_v27, %v1188_v6  ;;  %vm153_vm4 = vcmp.lt.s32.totalorder %v117_v27, %v1195_v9  ;;  %vm141_vm1 = vcmp.ge.s32.totalorder %v122_v47, %v1188_v6 }
  0x22   :  { %934 = vmatpush3.bf16.xpose.msk.msra.mxu0 %vm1205_vm7, %v932_v17  ;;  %v936_v23 = vpack.c.bf16 %v641_v22, %v640_v21  ;;  %vm1256_vm9 = vmand %vm134_vm5, %vm151_vm6  ;;  %v642_v28 = vsel %vm1252_vm8, 1.0, %v1130_v4  ;;  %vm158_vm2 = vcmp.lt.s32.totalorder %v122_v47, %v1195_v9  ;;  %v124_v53 = vadd.s32 112, %v1174_v2  ;;  %v704_v21 = vld [vmem:[%s1612_s2] ss:$0 sm:$0xff]  ;;  %s1133_s2 = smov [#allocation5]  }
  0x23   :  { %935 = vmatprep.subr.bf16.mxu0 %v1129_v1  ;;  %v643_v29 = vsel %vm1256_vm9, 1.0, %v1130_v4  ;;  %vm1274_vm5 = vmand %vm135_vm11, %vm152_vm12  ;;  %vm155_vm11 = vcmp.lt.s32.totalorder %v119_v36, %v1195_v9  ;;  %v125_v54 = vadd.s32 120, %v1174_v2  ;;  %s610_s6 = sshll.u32 %s1133_s2, 4  ;;  %s611_s6 = int_to_ptr.vmem [resolvable:$true] %s610_s6 }
  0x24   :  { %v940_v31 = vpack.c.bf16 %v643_v29, %v642_v28  ;;  %vm1282_vm6 = vmpackc.low %vm1218_vm13, %vm1212_vm10  ;;  %v644_v38 = vsel %vm1274_vm5, 1.0, %v1130_v4  ;;  %vm137_vm13 = vcmp.ge.s32.totalorder %v118_v34, %v1188_v6  ;;  %s1076_s11 = scalar_lea.vmem %s611_s6, 16  ;;  %s1080_s12 = scalar_lea.vmem %s611_s6, 32 }
  0x25   :  { %vm1286_vm0 = vmand %vm136_vm3, %vm153_vm4  ;;  %965 = vmatpush3.bf16.msk.msra.mxu1 %vm1282_vm6, %v1132_v35  ;;  %p1077_p8 = scmp.ne.s32.totalorder %s611_s6, %s1076_s11  ;;  %p1081_p9 = scmp.lt.s32.totalorder %s611_s6, %s611_s6 }
  0x26   :  { %966 = vmatprep.subr.bf16.mxu1 %v1129_v1  ;;  %vm1300_vm10 = vmpackc.low %vm1232_vm15, %vm1228_vm14  ;;  %v645_v39 = vsel %vm1286_vm0, 1.0, %v1130_v4  ;;  %vm154_vm14 = vcmp.lt.s32.totalorder %v118_v34, %v1195_v9  ;;  %vm138_vm15 = vcmp.ge.s32.totalorder %v119_v36, %v1188_v6  ;;  %p1082_p10 = scmp.lt.s32.totalorder %s1080_s12, %s1076_s11 }
  0x27   :  { %vm1325_vm12 = vmpackc.low %vm1256_vm9, %vm1252_vm8  ;;  %v944_v41 = vpack.c.bf16 %v645_v39, %v644_v38  ;;  %vm156_vm9 = vcmp.lt.s32.totalorder %v120_v44, %v1195_v9 }
  0x28   :  { %vm1329_vm3 = vmand %vm137_vm13, %vm154_vm14  ;;  %vm157_vm13 = vcmp.lt.s32.totalorder %v121_v45, %v1195_v9  ;;  %p1083_p11 = por %p1082_p10, %p1081_p9 }
  0x29   :  { %968 = vmatpush3.bf16.msk.msra.mxu1 %vm1300_vm10, %v1132_v35  ;;  %vm1333_vm4 = vmand %vm138_vm15, %vm155_vm11  ;;  %v646_v48 = vsel %vm1329_vm3, 1.0, %v1130_v4 }
  0x2a   :  { %938 = vmatpush3.bf16.xpose.msk.msra.mxu0 %vm1205_vm7, %v936_v23  ;;  %969 = vmatprep.subr.bf16.mxu1 %v1129_v1  ;;  %vm1347_vm8 = vmpackc.low %vm1286_vm0, %vm1274_vm5  ;;  %v647_v49 = vsel %vm1333_vm4, 1.0, %v1130_v4  ;;  %vm139_vm0 = vcmp.ge.s32.totalorder %v120_v44, %v1188_v6  ;;  %vm140_vm5 = vcmp.ge.s32.totalorder %v121_v45, %v1188_v6  ;;  %p1084_p12 = pnand %p1083_p11, %p1077_p8 }
  0x2b   :  { %939 = vmatprep.subr.bf16.mxu0 %v1129_v1  ;;  %v1650_v46 = vsel %vm1347_vm8, 4294967295, %v1649_v46  ;;  %vm1374_vm14 = vmpackc.low %vm1333_vm4, %vm1329_vm3  ;;  %v948_v52 = vpack.c.bf16 %v647_v49, %v646_v48  ;;  %vm159_vm3 = vcmp.lt.s32.totalorder %v123_v50, %v1195_v9 }
  0x2c   :  { %vm172_vm15 = vmand %vm139_vm0, %vm156_vm9 }
  0x2d   :  { %971 = vmatpush3.bf16.msk.msra.mxu1 %vm1325_vm12, %v1132_v35  ;;  %vm173_vm11 = vmand %vm140_vm5, %vm157_vm13  ;;  %v648_v57 = vsel %vm172_vm15, 1.0, %v1130_v4  ;;  %vm143_vm5 = vcmp.ge.s32.totalorder %v124_v53, %v1188_v6  ;;  %vm160_vm13 = vcmp.lt.s32.totalorder %v124_v53, %v1195_v9 }
  0x2e   :  { %972 = vmatprep.subr.bf16.mxu1 %v1129_v1  ;;  %vm1388_vm4 = vmpackc.low %vm173_vm11, %vm172_vm15  ;;  %v649_v58 = vsel %vm173_vm11, 1.0, %v1130_v4 }
  0x2f   :  { %vm1394_vm0 = vmand %vm141_vm1, %vm158_vm2  ;;  %vm144_vm1 = vcmp.ge.s32.totalorder %v125_v54, %v1188_v6  ;;  %vm161_vm2 = vcmp.lt.s32.totalorder %v125_v54, %v1195_v9  ;;  %v952_v61 = vpack.c.bf16 %v649_v58, %v648_v57  ;;  %v572_v57 = vld [vmem:[#allocation5] sm:$0x1]  ;;  %v588_v58 = vld [vmem:[#allocation6] sm:$0x1] }
  0x30   :  { %vm1421_vm15 = vmand %vm143_vm5, %vm160_vm13  ;;  %v650_v5 = vsel %vm1394_vm0, 1.0, %v1130_v4  ;;  %vm107_vm5 = vcmp.ge.s32.totalorder %v1457_v8, 0  ;;  %vm1669_vm13 = vcmask 130048  }
  0x31   :  { %974 = vmatpush3.bf16.msk.msra.mxu1 %vm1347_vm8, %v1132_v35  ;;  %vm142_vm8 = vcmp.ge.s32.totalorder %v123_v50, %v1188_v6  ;;  %vm1425_vm11 = vmand %vm144_vm1, %vm161_vm2  ;;  %v652_v12 = vsel %vm1421_vm15, 1.0, %v1130_v4  ;;  %vm1670_vm1 = vmmov 0  }
  0x32   :  { %942 = vmatpush3.bf16.xpose.msk.msra.mxu0 %vm1205_vm7, %v940_v31  ;;  %975 = vmatprep.subr.bf16.mxu1 %v1129_v1  ;;  %vm1401_vm9 = vmand %vm142_vm8, %vm159_vm3  ;;  %v653_v13 = vsel %vm1425_vm11, 1.0, %v1130_v4 }
  0x33   :  { %943 = vmatprep.subr.bf16.mxu0 %v1129_v1  ;;  %vm1417_vm8 = vmpackc.low %vm1401_vm9, %vm1394_vm0  ;;  %v651_v7 = vsel %vm1401_vm9, 1.0, %v1130_v4  ;;  %vm108_vm0 = vcmp.lt.s32.totalorder %v1457_v8, 8  ;;  %v960_v15 = vpack.c.bf16 %v653_v13, %v652_v12 }
  0x34   :  { %vm1437_vm3 = vmpackc.low %vm1425_vm11, %vm1421_vm15  ;;  %v956_v9 = vpack.c.bf16 %v651_v7, %v650_v5  ;;  %vm1676_vm15 = vcmask 0  }
  0x35   :  { %977 = vmatpush3.bf16.msk.msra.mxu1 %vm1374_vm14, %v1132_v35  ;;  %vm1470_vm9 = vmand %vm107_vm5, %vm108_vm0 }
  0x36   :  { %978 = vmatprep.subr.bf16.mxu1 %v1129_v1  ;;  %v110_v16 = vsel %vm1470_vm9, %v1457_v8, 0  ;;  %vm1674_vm2 = vmmov %vm1669_vm13 }
  0x37   :  { %v210_v17 = vadd.s32 %v1188_v6, %v110_v16  ;;  %vm1677_vm11 = vmmov %vm1676_vm15 }
  0x39   :  { %980 = vmatpush3.bf16.msk.msra.mxu1 %vm1388_vm4, %v1132_v35  ;;  %v211_v18 = vcvt.s32.f32 %v210_v17 }
  0x3a   :  { %946 = vmatpush3.bf16.xpose.msk.msra.mxu0 %vm1205_vm7, %v944_v41  ;;  %981 = vmatprep.subr.bf16.mxu1 %v1129_v1 }
  0x3b   :  { %947 = vmatprep.subr.bf16.mxu0 %v1129_v1 }
  0x3d   :  { %983 = vmatpush3.bf16.msk.msra.mxu1 %vm1417_vm8, %v1132_v35 }
  0x3e   :  { %984 = vmatprep.subr.bf16.mxu1 %v1129_v1 }
  0x41   :  { %986 = vmatpush3.bf16.msk.msra.mxu1 %vm1437_vm3, %v1132_v35 }
  0x42   :  { %950 = vmatpush3.bf16.xpose.msk.msra.mxu0 %vm1205_vm7, %v948_v52  ;;  %987 = vmatprep.subr.bf16.mxu1 %v1129_v1 }
  0x43   :  { %951 = vmatprep.subr.bf16.mxu0 %v1129_v1 }
  0x4a   :  { %954 = vmatpush3.bf16.xpose.msk.msra.mxu0 %vm1205_vm7, %v952_v61 }
  0x4b   :  { %955 = vmatprep.subr.bf16.mxu0 %v1129_v1 }
  0x52   :  { %958 = vmatpush3.bf16.xpose.msk.msra.mxu0 %vm1205_vm7, %v956_v9 }
  0x53   :  { %959 = vmatprep.subr.bf16.mxu0 %v1129_v1 }
  0x5a   :  { %962 = vmatpush3.bf16.xpose.msk.msra.mxu0 %vm1205_vm7, %v960_v15  ;;  %vm1671_vm7 = vnez %v1650_v46 }
  0x5b   :  { %1011 = vmatprep.subr.bf16.mxu0 %v1129_v1 }
  0x61   :  { %824 = vmatmul.mubr.msk.f32.vlgmr.msra.gmra.mrb[0].mxu0 %vm1669_vm13, %v211_v18 }
  0x62   :  { %1013 = vmatpush3.bf16.msk.msra.mxu0 %vm1282_vm6, %v1132_v35  ;;  %928 = vmatprep.mubr.msk.f32.mxu0 %vm1670_vm1, %v1130_v4 }
  0x63   :  { %1014 = vmatprep.subr.bf16.mxu0 %v1129_v1 }
  0x66   :  { %1016 = vmatpush3.bf16.msk.msra.mxu0 %vm1300_vm10, %v1132_v35 }
  0x67   :  { %1017 = vmatprep.subr.bf16.mxu0 %v1129_v1 }
  0x6a   :  { %1019 = vmatpush3.bf16.msk.msra.mxu0 %vm1325_vm12, %v1132_v35 }
  0x6b   :  { %1020 = vmatprep.subr.bf16.mxu0 %v1129_v1 }
  0x6e   :  { %1022 = vmatpush3.bf16.msk.msra.mxu0 %vm1671_vm7, %v1132_v35 }
  0x6f   :  { %1023 = vmatprep.subr.bf16.mxu0 %v1129_v1 }
  0x72   :  { %1025 = vmatpush3.bf16.msk.msra.mxu0 %vm1374_vm14, %v1132_v35 }
  0x73   :  { %1026 = vmatprep.subr.bf16.mxu0 %v1129_v1 }
  0x76   :  { %1028 = vmatpush3.bf16.msk.msra.mxu0 %vm1388_vm4, %v1132_v35 }
  0x77   :  { %1029 = vmatprep.subr.bf16.mxu0 %v1129_v1 }
  0x7a   :  { %1031 = vmatpush3.bf16.msk.msra.mxu0 %vm1417_vm8, %v1132_v35 }
  0x7b   :  { %1032 = vmatprep.subr.bf16.mxu0 %v1129_v1 }
  0x7e   :  { %1034 = vmatpush3.bf16.msk.msra.mxu0 %vm1437_vm3, %v1132_v35 }
  0xa6   :  { %v103_v6 = vpop.xlane.xlu0 %102 }
  0xa7   :  { %v104_v11 = vsub.f32 %v1198_v10, %v103_v6  ;;  %v334_v10 = vcvt.s32.f32 %v1176_v3 }
  0xa9   :  { %v105_v19 = vmul.f32 1.442695, %v104_v11 }
  0xab   :  { %1048 = vpow2.f32 %v105_v19 }
  0xb5   :  { %v1049_v20 = vpop.eup %1048 }
  0xb6   :  { %859 = vmatmul.mubr.f32.vlgmr.msra.gmra.mrb[0].mxu1 %v1049_v20 }
  0xb7   :  { %989 = vmatpush3.bf16.msk.msra.mxu1 %vm1282_vm6, %v1132_v35  ;;  %893 = vmatprep.mubr.msk.f32.mxu1 %vm1670_vm1, %v1130_v4 }
  0xb8   :  { %990 = vmatprep.subr.bf16.mxu1 %v1129_v1 }
  0xbb   :  { %992 = vmatpush3.bf16.msk.msra.mxu1 %vm1300_vm10, %v1132_v35  ;;  %vm99_vm10 = vcmp.lt.s32.totalorder %v1174_v2, 1 }
  0xbc   :  { %993 = vmatprep.subr.bf16.mxu1 %v1129_v1 }
  0xbf   :  { %995 = vmatpush3.bf16.msk.msra.mxu1 %vm1325_vm12, %v1132_v35  ;;  %vm567_vm12 = vcmp.ne.s32.totalorder %v1457_v8, 4294967196 }
  0xc0   :  { %996 = vmatprep.subr.bf16.mxu1 %v1129_v1 }
  0xc3   :  { %998 = vmatpush3.bf16.msk.msra.mxu1 %vm1671_vm7, %v1132_v35 }
  0xc4   :  { %999 = vmatprep.subr.bf16.mxu1 %v1129_v1 }
  0xc7   :  { %1001 = vmatpush3.bf16.msk.msra.mxu1 %vm1374_vm14, %v1132_v35  ;;  %vm1555_vm14 = vmand %vm99_vm10, %vm567_vm12 }
  0xc8   :  { %1002 = vmatprep.subr.bf16.mxu1 %v1129_v1 }
  0xcb   :  { %1004 = vmatpush3.bf16.msk.msra.mxu1 %vm1388_vm4, %v1132_v35  ;;  %vm571_vm4 = vmand %vm1555_vm14, %vm1470_vm9 }
  0xcc   :  { %1005 = vmatprep.subr.bf16.mxu1 %v1129_v1  ;;  %v722_v3 = vsel %vm571_vm4, 1.0, %v1130_v4 }
  0xcd   :  { %v591_v2 = vsel %vm1674_vm2, %v722_v3, 0.0 }
  0xce   :  { %592 = vadd.xlane.f32.xlu1 %v591_v2 }
  0xcf   :  { %1007 = vmatpush3.bf16.msk.msra.mxu1 %vm1417_vm8, %v1132_v35  ;;  %vm1675_vm8 = vmmov %vm1674_vm2 }
  0xd0   :  { %1008 = vmatprep.subr.bf16.mxu1 %v1129_v1 }
  0xd3   :  { %1010 = vmatpush3.bf16.msk.msra.mxu1 %vm1437_vm3, %v1132_v35 }
 0x134   :  { %v330_v22 = vpop.f32.mrb[0].mxu0 }
 0x135   :  { %vm335_vm6 = vcmp.eq.f32.partialorder %v334_v10, %v330_v22  ;;  %v825_v23 = vpop.f32.mrb[1].mxu0 }
 0x136   :  { %894 = vmatmul.mubr.msk.f32.vlgmr.msra.gmra.mrb[2].mxu1 %vm335_vm6, %v104_v11  ;;  %929 = vmatmul.mubr.msk.f32.vlgmr.msra.gmra.mrb[2].mxu0 %vm335_vm6, %v704_v21 }
 0x15b   :  { %v593_v43 = vpop.xlane.xlu1 %592 }
 0x15c   :  { %v594_v44 = vrot.slane %v593_v43, 4 }
 0x15e   :  { %v595_v45 = vadd.f32 %v594_v44, %v593_v43 }
 0x160   :  { %v596_v46 = vrot.slane %v595_v45, 2 }
 0x162   :  { %v597_v50 = vadd.f32 %v596_v46, %v595_v45 }
 0x164   :  { %v598_v53 = vrot.slane %v597_v50, 1 }
 0x166   :  { %v599_v56 = vadd.f32 %v598_v53, %v597_v50 }
 0x189   :  { %v402_v24 = vpop.f32.mrb[0].mxu1 }
 0x18a   :  { %v860_v25 = vpop.f32.mrb[1].mxu1  ;;  %v555_v26 = vmax.f32 %v402_v24, 1e-37 }
 0x18c   :  { %1050 = vlog2.f32 %v555_v26 }
 0x196   :  { %v1051_v27 = vpop.eup %1050 }
 0x197   :  { %v557_v28 = vmul.f32 0.6931472, %v1051_v27 }
 0x209   :  { %v473_v29 = vpop.f32.mrb[2].mxu1  ;;  %v551_v30 = vpop.f32.mrb[2].mxu0 }
 0x20a   :  { %v558_v31 = vsub.f32 %v473_v29, %v557_v28  ;;  %v895_v32 = vpop.f32.mrb[3].mxu1  ;;  %v930_v33 = vpop.f32.mrb[3].mxu0 }
 0x20c   :  { %v559_v34 = vmul.f32 1.442695, %v558_v31  ;;  %v561_v35 = vmul.f32 %v558_v31, %v551_v30 }
 0x20e   :  { %1052 = vpow2.f32 %v559_v34 }
 0x218   :  { %v1053_v36 = vpop.eup %1052 }
 0x219   :  { %v562_v37 = vsub.f32 1.0, %v1053_v36 }
 0x21b   :  { %v563_v38 = vmax.f32 %v562_v37, 0.0 }
 0x21d   :  { %v564_v39 = vmul.f32 %v563_v38, %v563_v38 }
 0x21f   :  { %v565_v4 = vmul.f32 %v564_v39, %v561_v35 }
 0x221   :  { %v566_v40 = vsub.f32 0.0, %v565_v4 }
 0x223   :  { %v573_v41 = vsel %vm571_vm4, %v566_v40, 0.0 }
 0x224   :  { %v574_v42 = vsel %vm1675_vm8, %v573_v41, 0.0 }
 0x225   :  { %575 = vadd.xlane.f32.xlu0 %v574_v42 }
 0x2b2   :  { %v576_v47 = vpop.xlane.xlu0 %575 }
 0x2b3   :  { %v577_v48 = vrot.slane %v576_v47, 4 }
 0x2b5   :  { %v578_v49 = vadd.f32 %v577_v48, %v576_v47 }
 0x2b7   :  { %v579_v51 = vrot.slane %v578_v49, 2 }
 0x2b9   :  { %v580_v52 = vadd.f32 %v579_v51, %v578_v49 }
 0x2bb   :  { %v581_v54 = vrot.slane %v580_v52, 1 }
 0x2bd   :  { %v582_v55 = vadd.f32 %v581_v54, %v580_v52 }
 0x2bf   :  { %1035 = vpush %v582_v55 }
 0x2c0   :  { %1037 = vpush %v599_v56 }
 0x2f0   :  { %s1036_s7 = spop %1035 }
 0x2f1   :  { %v584_v59 = vstv %s1036_s7  ;;  %s1038_s10 = spop %1037 }
 0x2f2   :  { %v585_v60 = vadd.f32 %v584_v59, %v572_v57  ;;  %v601_v61 = vstv %s1038_s10 }
 0x2f3   :  { %v602_v62 = vadd.f32 %v601_v61, %v588_v58 }
 0x2f4   :  { %587 = vst.msk [vmem:[#allocation5] sm:$0x1] %vm1676_vm15, %v585_v60 }
 0x2f5   :  { %603 = vst.msk [vmem:[#allocation6] sm:$0x1] %vm1677_vm11, %v602_v62 }
 0x2f6   :  { %1087 = shalt.err (!%p1084_p12)
}
 0x2f7   :  { %s1088_s15 = scalar_lea.hbm %s1613_s3, 16 }
 0x2f8   :  { %p1089_p13 = scmp.ne.s32.totalorder %s1613_s3, %s1088_s15  ;;  %p1092_p0 = scmp.lt.u32.totalorder %s1088_s15, %s1613_s3 }
 0x2fa   :  { %p1094_p1 = pnand %p1092_p0, %p1089_p13 }
 0x2fc   :  { %1097 = shalt.err (!%p1094_p1)
}
 0x2fd   :  { %613 = dma.vmem_to_hbm [thread:$0]  %s611_s6, 16, %s1613_s3, [#allocation4]  }
 0x2fe   :  { %s1098_s22 = scalar_lea.vmem %s1576_s9, 16  ;;  %s1102_s23 = scalar_lea.vmem %s1576_s9, 32 }
 0x2ff   :  { %p1099_p2 = scmp.ne.s32.totalorder %s1576_s9, %s1098_s22  ;;  %p1103_p3 = scmp.lt.s32.totalorder %s1576_s9, %s1576_s9 }
 0x300   :  { %p1104_p4 = scmp.lt.s32.totalorder %s1102_s23, %s1098_s22 }
 0x302   :  { %p1105_p5 = por %p1104_p4, %p1103_p3 }
 0x304   :  { %p1106_p6 = pnand %p1105_p5, %p1099_p2 }
 0x306   :  { %1109 = shalt.err (!%p1106_p6)
}
 0x307   :  { %s1110_s26 = scalar_lea.hbm %s1614_s4, 16 }
 0x308   :  { %p1111_p7 = scmp.ne.s32.totalorder %s1614_s4, %s1110_s26  ;;  %p1114_p8 = scmp.lt.u32.totalorder %s1110_s26, %s1614_s4 }
 0x30a   :  { %p1116_p9 = pnand %p1114_p8, %p1111_p7 }
 0x30c   :  { %1119 = shalt.err (!%p1116_p9)
}
 0x30d   :  { %623 = dma.vmem_to_hbm [thread:$0]  %s1576_s9, 16, %s1614_s4, [#allocation7]  }
 0x30e   :  { %1122 = dma.done.wait [#allocation4], 16  }
 0x30f   :  { %1123 = vsyncadd [#allocation4], 4294967280 }
 0x310   :  { %1124 = dma.done.wait [#allocation7], 16  }
 0x311   :  { %1125 = vsyncadd [#allocation7], 4294967280 }
 0x312   :  { %630 = vsyncpa [#allocation3], 1 }
 0x313   :  { %631 = vsyncpa [#allocation4], 1 }
 0x314   :  { %632 = vsyncpa [#allocation7], 1 }

</bundles_post_ra>
